<compile_context>
chip_gen: v7x
topology: tpu7x:2x2x1
jax: 0.10.0
libtpu: 0.0.40
codegen_flags: <defaults>
</compile_context>

<pallas_src>
import functools
import math

import jax
import jax.numpy as jnp
from jax.experimental import pallas as pl
from jax.experimental.pallas import tpu as pltpu


def _round_up(n, m):
    return ((n + m - 1) // m) * m


def _gelu_exact(x):
    # Matches torch.nn.GELU() default (erf-based).
    return 0.5 * x * (1.0 + jax.lax.erf(x * (1.0 / math.sqrt(2.0))))


def _gg3d_kernel(x_ref, w1_ref, b1_ref, w23_ref, b23_ref, out_ref):
    """Linear -> GELU -> fused(Linear, out_layer) -> normalized logits,
    for one (tm, D) row tile."""
    x = x_ref[...]

    # GELUMLP first linear + GELU.
    h = _gelu_exact(
        jnp.dot(x, w1_ref[...], preferred_element_type=jnp.float32) + b1_ref[...])

    # Fused (second GELUMLP linear @ out_layer): one (tm, D) @ (D, n_modes).
    logits = jnp.dot(h, w23_ref[...], preferred_element_type=jnp.float32) + b23_ref[...]

    # OneHotCategorical normalization: logits - logsumexp(logits).
    m = jnp.max(logits, axis=-1, keepdims=True)
    lse = m + jnp.log(jnp.sum(jnp.exp(logits - m), axis=-1, keepdims=True))
    out_ref[...] = (logits - lse).astype(out_ref.dtype)


def fuse_params(params):
    """Fold the second GELUMLP linear into out_layer (no nonlinearity between
    them).  Call once at setup, not per forward."""
    w23 = params["w2"] @ params["w3"]
    b23 = params["b2"] @ params["w3"] + params["b3"]
    return {"w1": params["w1"], "b1": params["b1"], "w23": w23, "b23": b23}


def _pick_tm(N, tm=None):
    if tm is None:
        # >= 4 parallel grid steps (keeps both v7x TensorCores busy with
        # pipelined work) while capping at 1024 rows — large tiles amortize
        # the ~0.35 us per-step overhead on v5e/v6e.  VMEM footprint stays at
        # a few hundred KB, far under every generation's scoped limit.
        tm = min(1024, pl.cdiv(N, 4))
    return _round_up(max(1, min(tm, N)), 8)


def gaussian_grid_3d_forward(x, fused_params, n_modes, tm=None,
                             out_dtype=jnp.float32):
    """Returns the normalized logits (log-probs) of OneHotCategorical(logits=...)."""
    N, D = x.shape
    assert fused_params["w1"].shape == (D, D)
    assert fused_params["w23"].shape == (D, n_modes)

    tm = _pick_tm(N, tm)
    grid = (pl.cdiv(N, tm),)

    weight_args = [fused_params["w1"], fused_params["b1"],
                   fused_params["w23"], fused_params["b23"]]

    def full_spec(a):
        # Whole array, same block every grid step -> stays resident in VMEM.
        nd = a.ndim
        return pl.BlockSpec(a.shape, lambda i: (0,) * nd)

    return pl.pallas_call(
        _gg3d_kernel,
        out_shape=jax.ShapeDtypeStruct((N, n_modes), out_dtype),
        grid=grid,
        in_specs=[pl.BlockSpec((tm, D), lambda i: (i, 0))]
                 + [full_spec(a) for a in weight_args],
        out_specs=pl.BlockSpec((tm, n_modes), lambda i: (i, 0)),
        compiler_params=pltpu.CompilerParams(
            dimension_semantics=("parallel",)),
    )(x, *weight_args)


# ------------------------- parameter construction ---------------------------

def _linear_params(key, fan_in, fan_out):
    # torch.nn.Linear default init: U(-1/sqrt(fan_in), 1/sqrt(fan_in)),
    # stored transposed as (in_features, out_features) so y = x @ W + b.
    kw, kb = jax.random.split(key)
    bound = 1.0 / math.sqrt(fan_in)
    w = jax.random.uniform(kw, (fan_in, fan_out), jnp.float32, -bound, bound)
    b = jax.random.uniform(kb, (1, fan_out), jnp.float32, -bound, bound)
    return w, b


def init_params(key, in_dim, n_modes, hidden_dim=None):
    if hidden_dim is None:
        hidden_dim = in_dim
    keys = jax.random.split(key, 3)
    p = {}
    # GELUMLP(in_dim, hidden_dim) = Linear(in, in) -> GELU -> Linear(in, hidden)
    # TODO(synk): GELUMLP definition is not in the reference snippet; the
    # standard neuralplexer GELUMLP (no dropout at inference) is assumed.
    p["w1"], p["b1"] = _linear_params(keys[0], in_dim, in_dim)
    p["w2"], p["b2"] = _linear_params(keys[1], in_dim, hidden_dim)
    # out_layer: Linear(hidden_dim, n_modes)
    p["w3"], p["b3"] = _linear_params(keys[2], hidden_dim, n_modes)
    return p


# ----------------------------- pure-JAX reference ---------------------------

def _reference(x, p):
    def gelu(v):
        return 0.5 * v * (1.0 + jax.lax.erf(v / math.sqrt(2.0)))
    h = gelu(x @ p["w1"] + p["b1"]) @ p["w2"] + p["b2"]
    logits = h @ p["w3"] + p["b3"]
    # OneHotCategorical(logits=...) normalizes: logits - logsumexp(logits)
    return logits - jax.scipy.special.logsumexp(logits, axis=-1, keepdims=True)


if __name__ == "__main__":
    # Small shapes consistent with the module:
    #   in_dim=32, rad_res=2, ang_res=4 -> n_modes = 2 * 2 * 4**2 = 64
    in_dim, rad_res, ang_res = 32, 2, 4
    n_modes = 2 * rad_res * ang_res ** 2
    N = 512  # rows of x; default tm -> 128-row tiles, 4 parallel grid steps

    key = jax.random.PRNGKey(0)
    kx, kp = jax.random.split(key)
    x = jax.random.normal(kx, (N, in_dim), jnp.float32)
    params = init_params(kp, in_dim, n_modes)

    # Fuse w2@w3 once, outside the hot path.
    fused = fuse_params(params)

    log_probs = gaussian_grid_3d_forward(x, fused, n_modes)
    jax.block_until_ready(log_probs)

    # Sanity check against a pure-JAX (unfused) reference; w2@w3 fusion only
    # introduces fp-reassociation-level drift.
    ref = _reference(x, params)
    assert log_probs.shape == (N, n_modes)
    assert jnp.allclose(log_probs, ref, atol=1e-4, rtol=1e-4)
    # Distribution sanity: probabilities sum to one per row.
    assert jnp.allclose(jnp.sum(jnp.exp(log_probs), axis=-1), 1.0, atol=1e-4)

    print("KERNEL_OK")
</pallas_src>

<mosaic_0001>
module attributes {stable_mosaic.version = 11 : i64} {
  func.func @_gg3d_kernel(%arg0: i32, %arg1: memref<128x32xf32, #tpu.memory_space<vmem>>, %arg2: memref<32x32xf32, #tpu.memory_space<vmem>>, %arg3: memref<1x32xf32, #tpu.memory_space<vmem>>, %arg4: memref<32x64xf32, #tpu.memory_space<vmem>>, %arg5: memref<1x64xf32, #tpu.memory_space<vmem>>, %arg6: memref<128x64xf32, #tpu.memory_space<vmem>>) attributes {dimension_semantics = [#tpu.dimension_semantics<parallel>], iteration_bounds = array<i64: 4>, scalar_prefetch = 0 : i64, scratch_operands = 0 : i64, tpu.core_type = #tpu.core_type<tc>, window_params = [{transform_indices = @transform_0, window_bounds = array<i64: 128, 32>}, {pipeline_mode = #tpu.pipeline_mode<synchronous>, transform_indices = @transform_1, window_bounds = array<i64: 32, 32>}, {pipeline_mode = #tpu.pipeline_mode<synchronous>, transform_indices = @transform_2, window_bounds = array<i64: 1, 32>}, {pipeline_mode = #tpu.pipeline_mode<synchronous>, transform_indices = @transform_3, window_bounds = array<i64: 32, 64>}, {pipeline_mode = #tpu.pipeline_mode<synchronous>, transform_indices = @transform_4, window_bounds = array<i64: 1, 64>}, {transform_indices = @transform_5, window_bounds = array<i64: 128, 64>}]} {
    %c0 = arith.constant 0 : index
    %c0_0 = arith.constant 0 : index
    %0 = vector.load %arg1[%c0, %c0_0] : memref<128x32xf32, #tpu.memory_space<vmem>>, vector<128x32xf32>
    %c0_1 = arith.constant 0 : index
    %c0_2 = arith.constant 0 : index
    %1 = vector.load %arg2[%c0_1, %c0_2] : memref<32x32xf32, #tpu.memory_space<vmem>>, vector<32x32xf32>
    %cst = arith.constant dense<0.000000e+00> : vector<128x32xf32>
    %2 = tpu.matmul %0, %1, %cst {dimension_numbers = #tpu.dot_dimension_numbers<[1], [0], [0], [1], [0, 0, 1, 1], [], []>} : vector<128x32xf32>, vector<32x32xf32>, vector<128x32xf32> -> vector<128x32xf32>
    %c0_3 = arith.constant 0 : index
    %c0_4 = arith.constant 0 : index
    %3 = vector.load %arg3[%c0_3, %c0_4] : memref<1x32xf32, #tpu.memory_space<vmem>>, vector<1x32xf32>
    %4 = vector.broadcast %3 : vector<1x32xf32> to vector<128x32xf32>
    %5 = arith.addf %2, %4 : vector<128x32xf32>
    %cst_5 = arith.constant 5.000000e-01 : f32
    %6 = vector.broadcast %cst_5 : f32 to vector<128x32xf32>
    %7 = arith.mulf %6, %5 : vector<128x32xf32>
    %cst_6 = arith.constant 0.707106769 : f32
    %8 = vector.broadcast %cst_6 : f32 to vector<128x32xf32>
    %9 = arith.mulf %5, %8 : vector<128x32xf32>
    %10 = math.erf %9 : vector<128x32xf32>
    %cst_7 = arith.constant 1.000000e+00 : f32
    %11 = vector.broadcast %cst_7 : f32 to vector<128x32xf32>
    %12 = arith.addf %11, %10 : vector<128x32xf32>
    %13 = arith.mulf %7, %12 : vector<128x32xf32>
    %c0_8 = arith.constant 0 : index
    %c0_9 = arith.constant 0 : index
    %14 = vector.load %arg4[%c0_8, %c0_9] : memref<32x64xf32, #tpu.memory_space<vmem>>, vector<32x64xf32>
    %cst_10 = arith.constant dense<0.000000e+00> : vector<128x64xf32>
    %15 = tpu.matmul %13, %14, %cst_10 {dimension_numbers = #tpu.dot_dimension_numbers<[1], [0], [0], [1], [0, 0, 1, 1], [], []>} : vector<128x32xf32>, vector<32x64xf32>, vector<128x64xf32> -> vector<128x64xf32>
    %c0_11 = arith.constant 0 : index
    %c0_12 = arith.constant 0 : index
    %16 = vector.load %arg5[%c0_11, %c0_12] : memref<1x64xf32, #tpu.memory_space<vmem>>, vector<1x64xf32>
    %17 = vector.broadcast %16 : vector<1x64xf32> to vector<128x64xf32>
    %18 = arith.addf %15, %17 : vector<128x64xf32>
    %cst_13 = arith.constant dense<0xFF800000> : vector<128xf32>
    %19 = vector.multi_reduction <maximumf>, %18, %cst_13 [1] : vector<128x64xf32> to vector<128xf32>
    %20 = vector.shape_cast %19 : vector<128xf32> to vector<128x1xf32>
    %21 = vector.broadcast %20 : vector<128x1xf32> to vector<128x64xf32>
    %22 = arith.subf %18, %21 : vector<128x64xf32>
    %23 = math.exp %22 : vector<128x64xf32>
    %cst_14 = arith.constant dense<0.000000e+00> : vector<128xf32>
    %24 = vector.multi_reduction <add>, %23, %cst_14 [1] : vector<128x64xf32> to vector<128xf32>
    %25 = vector.shape_cast %24 : vector<128xf32> to vector<128x1xf32>
    %26 = math.log %25 : vector<128x1xf32>
    %27 = arith.addf %20, %26 : vector<128x1xf32>
    %28 = vector.broadcast %27 : vector<128x1xf32> to vector<128x64xf32>
    %29 = arith.subf %18, %28 : vector<128x64xf32>
    %c0_15 = arith.constant 0 : index
    %c0_16 = arith.constant 0 : index
    %30 = vector.load %arg6[%c0_15, %c0_16] : memref<128x64xf32, #tpu.memory_space<vmem>>, vector<128x64xf32>
    tpu.vector_store %arg6[%c0_15, %c0_16], %29 {strides = array<i32>} : memref<128x64xf32, #tpu.memory_space<vmem>>, vector<128x64xf32>,
    return
  }
  func.func @transform_0(%arg0: i32) -> (i32, i32) {
    %c0_i32 = arith.constant 0 : i32
    %c0_i32_0 = arith.constant 0 : i32
    return %arg0, %c0_i32 : i32, i32
  }
  func.func @transform_1(%arg0: i32) -> (i32, i32) {
    %c0_i32 = arith.constant 0 : i32
    %c0_i32_0 = arith.constant 0 : i32
    %c0_i32_1 = arith.constant 0 : i32
    return %c0_i32, %c0_i32_0 : i32, i32
  }
  func.func @transform_2(%arg0: i32) -> (i32, i32) {
    %c0_i32 = arith.constant 0 : i32
    %c0_i32_0 = arith.constant 0 : i32
    %c0_i32_1 = arith.constant 0 : i32
    return %c0_i32, %c0_i32_0 : i32, i32
  }
  func.func @transform_3(%arg0: i32) -> (i32, i32) {
    %c0_i32 = arith.constant 0 : i32
    %c0_i32_0 = arith.constant 0 : i32
    %c0_i32_1 = arith.constant 0 : i32
    return %c0_i32, %c0_i32_0 : i32, i32
  }
  func.func @transform_4(%arg0: i32) -> (i32, i32) {
    %c0_i32 = arith.constant 0 : i32
    %c0_i32_0 = arith.constant 0 : i32
    %c0_i32_1 = arith.constant 0 : i32
    return %c0_i32, %c0_i32_0 : i32, i32
  }
  func.func @transform_5(%arg0: i32) -> (i32, i32) {
    %c0_i32 = arith.constant 0 : i32
    %c0_i32_0 = arith.constant 0 : i32
    return %arg0, %c0_i32 : i32, i32
  }
}

</mosaic_0001>

<bundles_post_ra>
// kernel: tpu_custom_call.1
= control target key start
LH: loop header
LB: loop body
LE: loop exit
PB: predicated region body
PF: predicated region fallthrough
CT: control target
= control target key end

     0   :  { %s1321_s18 = smov 0   ;;  %s1665_s0 = inlined_call_operand.vmem [shape: f32[512,32], index: 0, kind: input, shape index: {}]   ;;  %s1666_s1 = inlined_call_operand.vmem [shape: f32[32,32], index: 1, kind: input, shape index: {}]   ;;  %s1667_s2 = inlined_call_operand.vmem [shape: f32[1,32], index: 2, kind: input, shape index: {}]   ;;  %s1668_s3 = inlined_call_operand.vmem [shape: f32[32,64], index: 3, kind: input, shape index: {}]   ;;  %s1669_s4 = inlined_call_operand.vmem [shape: f32[1,64], index: 4, kind: input, shape index: {}]   ;;  %s1670_s5 = inlined_call_operand.vmem [shape: f32[512,64], index: 5, kind: output, shape index: {}]  }
   0x1 LB: > { %s1014_s19 = sadd.s32 4294967295, %s1289_s18   ;;  %p1018_p0 = scmp.ge.s32.totalorder %s1289_s18, 1  ;;  %s1289_s18 = sphi %s1321_s18, %s15_s18  }
   0x2   : > { %p188_p1 = scmp.lt.s32.totalorder %s1289_s18, 5 }
   0x4   : > { %p189_p2 = pnand %p1018_p0, %p188_p1 }
   0x5   : > { %v244_v0 = vld [vmem:[%s1666_s1] sm:$0xff] (!%p189_p2)  ;;  %v245_v1 = vld [vmem:[%s1666_s1 + $0x8] sm:$0xff] (!%p189_p2)  ;;  %v246_v2 = vld [vmem:[%s1666_s1 + $0x10] sm:$0xff] (!%p189_p2)  ;;  %s1019_s26 = sshll.u32 (!%p189_p2), %s1014_s19, 4  ;;  %vm255_vm0 = vcmask (!%p189_p2), 261120   ;;  %vm733_vm1 = vcmask (!%p189_p2), 523264  }
   0x6   : > { %192 = sbr.rel (%p189_p2) target bundleno = 817 (0x331), region = 40  ;;  %v1163_v3 = vpack.c.bf16 (!%p189_p2), %v245_v1, %v244_v0  ;;  %v247_v4 = vld [vmem:[%s1666_s1 + $0x18] sm:$0xff] (!%p189_p2)  ;;  %p217_p3 = scmp.lt.s32.totalorder (!%p189_p2), %s1019_s26, 63  ;;  %v529_v22 = vld [vmem:[%s1668_s3] sm:$0xff] (!%p189_p2)  ;;  %v530_v23 = vld [vmem:[%s1668_s3 + $0x8] sm:$0xff] (!%p189_p2) }
   0x7   : > { %v1167_v5 = vpack.c.bf16 (!%p189_p2), %v247_v4, %v246_v2  ;;  %v1171_v24 = vpack.c.bf16 (!%p189_p2), %v530_v23, %v529_v22  ;;  %v531_v25 = vld [vmem:[%s1668_s3 + $0x10] sm:$0xff] (!%p189_p2)  ;;  %v532_v26 = vld [vmem:[%s1668_s3 + $0x18] sm:$0xff] (!%p189_p2)  ;;  %v1398_v28 = vld [vmem:[%s1667_s2] ss:$0 sm:$0xff] (!%p189_p2) }
   0x8   : > { %1164 = vmatprep.subr.bf16.mxu0 (!%p189_p2), %v1163_v3  ;;  %v1175_v27 = vpack.c.bf16 (!%p189_p2), %v532_v26, %v531_v25 }
   0x9   : > { %1166 = vmatpush3.bf16.msra.mxu0 (!%p189_p2), %v1163_v3  ;;  %1172 = vmatprep.subr.bf16.mxu1 (!%p189_p2), %v1171_v24 }
   0xa   : > { %1168 = vmatprep.subr.bf16.mxu0 (!%p189_p2), %v1167_v5  ;;  %1174 = vmatpush3.bf16.msra.mxu1 (!%p189_p2), %v1171_v24 }
   0xb   : > { %1176 = vmatprep.subr.bf16.mxu1 (!%p189_p2), %v1175_v27 }
   0xd   : > { %s1672_s26 = smov (!%p217_p3, %s1019_s26), 63  ;;  %1170 = vmatpush3.bf16.msra.mxu0 %v1167_v5 }
   0xe   : > { %s1020_s29 = sshll.u32 %s1672_s26, 3  ;;  %1178 = vmatpush3.bf16.msra.mxu1 %v1175_v27 }
   0xf   : > { %s1349_s7 = scalar_lea.vmem %s1665_s0, %s1020_s29  ;;  %s1597_s23 = scalar_lea.vmem %s1670_s5, %s1020_s29 }
  0x10   : > { %v228_v6 = vld [vmem:[%s1349_s7] sm:$0xff]  ;;  %v229_v7 = vld [vmem:[%s1349_s7 + $0x8] sm:$0xff]  ;;  %v230_v8 = vld [vmem:[%s1349_s7 + $0x10] sm:$0xff] }
  0x11   : > { %1107 = vmatprep.mubr.msk.f32.mxu0 %vm255_vm0, %v228_v6  ;;  %v231_v9 = vld [vmem:[%s1349_s7 + $0x18] sm:$0xff]  ;;  %v232_v10 = vld [vmem:[%s1349_s7 + $0x20] sm:$0xff]  ;;  %v233_v11 = vld [vmem:[%s1349_s7 + $0x28] sm:$0xff] }
  0x12   : > { %1108 = vmatmul.mubr.msk.f32.vlgmr.msra.gmra.mrb[0].mxu0 %vm255_vm0, %v229_v7  ;;  %v234_v12 = vld [vmem:[%s1349_s7 + $0x30] sm:$0xff]  ;;  %v235_v13 = vld [vmem:[%s1349_s7 + $0x38] sm:$0xff]  ;;  %v236_v14 = vld [vmem:[%s1349_s7 + $0x40] sm:$0xff] }
  0x13   : > { %1110 = vmatprep.mubr.msk.f32.mxu0 %vm255_vm0, %v230_v8  ;;  %v237_v15 = vld [vmem:[%s1349_s7 + $0x48] sm:$0xff]  ;;  %v238_v16 = vld [vmem:[%s1349_s7 + $0x50] sm:$0xff]  ;;  %v239_v17 = vld [vmem:[%s1349_s7 + $0x58] sm:$0xff] }
  0x14   : > { %v240_v18 = vld [vmem:[%s1349_s7 + $0x60] sm:$0xff]  ;;  %v241_v19 = vld [vmem:[%s1349_s7 + $0x68] sm:$0xff]  ;;  %v242_v20 = vld [vmem:[%s1349_s7 + $0x70] sm:$0xff] }
  0x15   : > { %v243_v21 = vld [vmem:[%s1349_s7 + $0x78] sm:$0xff] }
  0x16   : > { %1111 = vmatmul.mubr.msk.f32.gmra.mrb[2].mxu0 %vm255_vm0, %v231_v9 }
  0x17   : > { %1113 = vmatprep.mubr.msk.f32.mxu0 %vm255_vm0, %v232_v10 }
  0x1a   : > { %1114 = vmatmul.mubr.msk.f32.gmra.mrb[4].mxu0 %vm255_vm0, %v233_v11 }
  0x1b   : > { %1116 = vmatprep.mubr.msk.f32.mxu0 %vm255_vm0, %v234_v12 }
  0x1e   : > { %1117 = vmatmul.mubr.msk.f32.gmra.mrb[6].mxu0 %vm255_vm0, %v235_v13 }
  0x1f   : > { %1119 = vmatprep.mubr.msk.f32.mxu0 %vm255_vm0, %v236_v14 }
  0x22   : > { %1120 = vmatmul.mubr.msk.f32.gmra.mrb[8].mxu0 %vm255_vm0, %v237_v15 }
  0x23   : > { %1122 = vmatprep.mubr.msk.f32.mxu0 %vm255_vm0, %v238_v16 }
  0x26   : > { %1123 = vmatmul.mubr.msk.f32.gmra.mrb[10].mxu0 %vm255_vm0, %v239_v17 }
  0x27   : > { %1125 = vmatprep.mubr.msk.f32.mxu0 %vm255_vm0, %v240_v18 }
  0x2a   : > { %1126 = vmatmul.mubr.msk.f32.gmra.mrb[12].mxu0 %vm255_vm0, %v241_v19 }
  0x2b   : > { %1128 = vmatprep.mubr.msk.f32.mxu0 %vm255_vm0, %v242_v20 }
  0x2e   : > { %1129 = vmatmul.mubr.msk.f32.gmra.mrb[14].mxu0 %vm255_vm0, %v243_v21 }
  0xe5   : > { %v1109_v29 = vpop.f32.mrb[0].mxu0 }
  0xe6   : > { %v376_v30 = vadd.f32 %v1109_v29, %v1398_v28  ;;  %v370_v31 = vpop.f32.mrb[1].mxu0 }
  0xe7   : > { %v371_v32 = vadd.f32 %v1398_v28, %v370_v31 }
  0xe8   : > { %v466_v33 = vmul.f32 0.70710677, %v376_v30  ;;  %v450_v61 = vmul.f32 0.5, %v376_v30 }
  0xe9   : > { %v465_v34 = vmul.f32 0.70710677, %v371_v32  ;;  %v1112_v35 = vpop.f32.mrb[2].mxu0  ;;  %v449_v57 = vmul.f32 0.5, %v371_v32 }
  0xea   : > { %1187 = verf.f32 %v466_v33  ;;  %v386_v36 = vadd.f32 %v1112_v35, %v1398_v28  ;;  %v380_v37 = vpop.f32.mrb[3].mxu0 }
  0xeb   : > { %1189 = verf.f32 %v465_v34  ;;  %v381_v38 = vadd.f32 %v1398_v28, %v380_v37 }
  0xec   : > { %v468_v39 = vmul.f32 0.70710677, %v386_v36  ;;  %v452_v11 = vmul.f32 0.5, %v386_v36 }
  0xed   : > { %v467_v40 = vmul.f32 0.70710677, %v381_v38  ;;  %v1115_v41 = vpop.f32.mrb[4].mxu0  ;;  %v451_v7 = vmul.f32 0.5, %v381_v38 }
  0xee   : > { %1191 = verf.f32 %v468_v39  ;;  %v396_v42 = vadd.f32 %v1115_v41, %v1398_v28  ;;  %v390_v43 = vpop.f32.mrb[5].mxu0 }
  0xef   : > { %1193 = verf.f32 %v467_v40  ;;  %v391_v44 = vadd.f32 %v1398_v28, %v390_v43 }
  0xf0   : > { %v470_v45 = vmul.f32 0.70710677, %v396_v42  ;;  %v454_v25 = vmul.f32 0.5, %v396_v42 }
  0xf1   : > { %v469_v46 = vmul.f32 0.70710677, %v391_v44  ;;  %v1118_v47 = vpop.f32.mrb[6].mxu0  ;;  %v453_v21 = vmul.f32 0.5, %v391_v44 }
  0xf2   : > { %1195 = verf.f32 %v470_v45  ;;  %v1407_v48 = vadd.f32 %v1118_v47, %v1398_v28  ;;  %v400_v49 = vpop.f32.mrb[7].mxu0 }
  0xf3   : > { %1197 = verf.f32 %v469_v46  ;;  %v401_v50 = vadd.f32 %v1398_v28, %v400_v49 }
  0xf4   : > { %v1188_v51 = vpop.eup %1187  ;;  %v472_v52 = vmul.f32 0.70710677, %v1407_v48  ;;  %v456_v40 = vmul.f32 0.5, %v1407_v48 }
  0xf5   : > { %v1190_v53 = vpop.eup %1189  ;;  %v498_v54 = vadd.f32 1.0, %v1188_v51  ;;  %v471_v55 = vmul.f32 0.70710677, %v401_v50  ;;  %v1121_v56 = vpop.f32.mrb[8].mxu0  ;;  %v455_v36 = vmul.f32 0.5, %v401_v50 }
  0xf6   : > { %1199 = verf.f32 %v472_v52  ;;  %v1412_v58 = vadd.f32 %v1121_v56, %v1398_v28  ;;  %v410_v59 = vpop.f32.mrb[9].mxu0  ;;  %v497_v60 = vadd.f32 1.0, %v1190_v53 }
  0xf7   : > { %1201 = verf.f32 %v471_v55  ;;  %v411_v62 = vadd.f32 %v1398_v28, %v410_v59  ;;  %v514_v3 = vmul.f32 %v498_v54, %v450_v61 }
  0xf8   : > { %v1192_v63 = vpop.eup %1191  ;;  %v474_v0 = vmul.f32 0.70710677, %v1412_v58  ;;  %v513_v1 = vmul.f32 %v497_v60, %v449_v57  ;;  %v458_v52 = vmul.f32 0.5, %v1412_v58 }
  0xf9   : > { %v1194_v2 = vpop.eup %1193  ;;  %v500_v4 = vadd.f32 1.0, %v1192_v63  ;;  %v473_v5 = vmul.f32 0.70710677, %v411_v62  ;;  %v1124_v6 = vpop.f32.mrb[10].mxu0  ;;  %v457_v50 = vmul.f32 0.5, %v411_v62 }
  0xfa   : > { %v499_v8 = vadd.f32 1.0, %v1194_v2  ;;  %1203 = verf.f32 %v474_v0  ;;  %v1417_v9 = vadd.f32 %v1124_v6, %v1398_v28  ;;  %v420_v10 = vpop.f32.mrb[11].mxu0  ;;  %1139 = vmatprep.mubr.msk.f32.mxu1 %vm255_vm0, %v513_v1 }
  0xfb   : > { %1205 = verf.f32 %v473_v5  ;;  %v421_v12 = vadd.f32 %v1398_v28, %v420_v10  ;;  %1140 = vmatmul.mubr.msk.f32.vlgmr.msra.gmra.mrb[0].mxu1 %vm255_vm0, %v514_v3  ;;  %v516_v17 = vmul.f32 %v500_v4, %v452_v11 }
  0xfc   : > { %v1196_v13 = vpop.eup %1195  ;;  %v515_v14 = vmul.f32 %v499_v8, %v451_v7  ;;  %v476_v15 = vmul.f32 0.70710677, %v1417_v9  ;;  %v460_v59 = vmul.f32 0.5, %v1417_v9 }
  0xfd   : > { %v1198_v16 = vpop.eup %1197  ;;  %v502_v18 = vadd.f32 1.0, %v1196_v13  ;;  %v475_v19 = vmul.f32 0.70710677, %v421_v12  ;;  %v1127_v20 = vpop.f32.mrb[12].mxu0  ;;  %v459_v56 = vmul.f32 0.5, %v421_v12 }
  0xfe   : > { %v501_v22 = vadd.f32 1.0, %v1198_v16  ;;  %1207 = verf.f32 %v476_v15  ;;  %v436_v23 = vadd.f32 %v1127_v20, %v1398_v28  ;;  %v430_v24 = vpop.f32.mrb[13].mxu0  ;;  %1142 = vmatprep.mubr.msk.f32.mxu1 %vm255_vm0, %v515_v14  ;;  %v1040_v13 = vld [vmem:[%s1669_s4] ss:$0 sm:$0xff] }
  0xff   : > { %1209 = verf.f32 %v475_v19  ;;  %v431_v26 = vadd.f32 %v1398_v28, %v430_v24  ;;  %1143 = vmatmul.mubr.msk.f32.gmra.mrb[2].mxu1 %vm255_vm0, %v516_v17  ;;  %v518_v32 = vmul.f32 %v502_v18, %v454_v25 }
 0x100   : > { %v1200_v27 = vpop.eup %1199  ;;  %v517_v29 = vmul.f32 %v501_v22, %v453_v21  ;;  %v478_v30 = vmul.f32 0.70710677, %v436_v23  ;;  %v462_v2 = vmul.f32 0.5, %v436_v23 }
 0x101   : > { %v1202_v31 = vpop.eup %1201  ;;  %v504_v33 = vadd.f32 1.0, %v1200_v27  ;;  %v477_v34 = vmul.f32 0.70710677, %v431_v26  ;;  %v1130_v35 = vpop.f32.mrb[14].mxu0  ;;  %v461_v0 = vmul.f32 0.5, %v431_v26 }
 0x102   : > { %v503_v37 = vadd.f32 1.0, %v1202_v31  ;;  %1211 = verf.f32 %v478_v30  ;;  %v446_v38 = vadd.f32 %v1130_v35, %v1398_v28  ;;  %v440_v39 = vpop.f32.mrb[15].mxu0  ;;  %1145 = vmatprep.mubr.msk.f32.mxu1 %vm255_vm0, %v517_v29 }
 0x103   : > { %1213 = verf.f32 %v477_v34  ;;  %v441_v41 = vadd.f32 %v1398_v28, %v440_v39  ;;  %1146 = vmatmul.mubr.msk.f32.gmra.mrb[4].mxu1 %vm255_vm0, %v518_v32  ;;  %v520_v46 = vmul.f32 %v504_v33, %v456_v40 }
 0x104   : > { %v1204_v42 = vpop.eup %1203  ;;  %v519_v43 = vmul.f32 %v503_v37, %v455_v36  ;;  %v480_v44 = vmul.f32 0.70710677, %v446_v38  ;;  %v464_v10 = vmul.f32 0.5, %v446_v38 }
 0x105   : > { %v1206_v45 = vpop.eup %1205  ;;  %v506_v47 = vadd.f32 1.0, %v1204_v42  ;;  %v479_v49 = vmul.f32 0.70710677, %v441_v41  ;;  %v463_v8 = vmul.f32 0.5, %v441_v41 }
 0x106   : > { %v505_v51 = vadd.f32 1.0, %v1206_v45  ;;  %1215 = verf.f32 %v480_v44  ;;  %1148 = vmatprep.mubr.msk.f32.mxu1 %vm255_vm0, %v519_v43 }
 0x107   : > { %1217 = verf.f32 %v479_v49  ;;  %1149 = vmatmul.mubr.msk.f32.gmra.mrb[6].mxu1 %vm255_vm0, %v520_v46  ;;  %v522_v54 = vmul.f32 %v506_v47, %v458_v52 }
 0x108   : > { %v1208_v28 = vpop.eup %1207  ;;  %v521_v48 = vmul.f32 %v505_v51, %v457_v50 }
 0x109   : > { %v1210_v53 = vpop.eup %1209  ;;  %v508_v55 = vadd.f32 1.0, %v1208_v28 }
 0x10a   : > { %v507_v57 = vadd.f32 1.0, %v1210_v53  ;;  %1151 = vmatprep.mubr.msk.f32.mxu1 %vm255_vm0, %v521_v48 }
 0x10b   : > { %1152 = vmatmul.mubr.msk.f32.gmra.mrb[8].mxu1 %vm255_vm0, %v522_v54  ;;  %v524_v58 = vmul.f32 %v508_v55, %v460_v59 }
 0x10c   : > { %v1212_v60 = vpop.eup %1211  ;;  %v523_v61 = vmul.f32 %v507_v57, %v459_v56 }
 0x10d   : > { %v1214_v62 = vpop.eup %1213  ;;  %v510_v63 = vadd.f32 1.0, %v1212_v60 }
 0x10e   : > { %v509_v1 = vadd.f32 1.0, %v1214_v62  ;;  %1154 = vmatprep.mubr.msk.f32.mxu1 %vm255_vm0, %v523_v61 }
 0x10f   : > { %1155 = vmatmul.mubr.msk.f32.gmra.mrb[10].mxu1 %vm255_vm0, %v524_v58  ;;  %v526_v6 = vmul.f32 %v510_v63, %v462_v2 }
 0x110   : > { %v1216_v3 = vpop.eup %1215  ;;  %v525_v4 = vmul.f32 %v509_v1, %v461_v0 }
 0x111   : > { %v1218_v5 = vpop.eup %1217  ;;  %v512_v7 = vadd.f32 1.0, %v1216_v3 }
 0x112   : > { %v511_v9 = vadd.f32 1.0, %v1218_v5  ;;  %1157 = vmatprep.mubr.msk.f32.mxu1 %vm255_vm0, %v525_v4 }
 0x113   : > { %1158 = vmatmul.mubr.msk.f32.gmra.mrb[12].mxu1 %vm255_vm0, %v526_v6  ;;  %v528_v12 = vmul.f32 %v512_v7, %v464_v10 }
 0x114   : > { %v527_v11 = vmul.f32 %v511_v9, %v463_v8 }
 0x116   : > { %1160 = vmatprep.mubr.msk.f32.mxu1 %vm255_vm0, %v527_v11 }
 0x117   : > { %1161 = vmatmul.mubr.msk.f32.gmra.mrb[14].mxu1 %vm255_vm0, %v528_v12 }
 0x1ce   : > { %v1141_v14 = vpop.f32.mrb[0].mxu1 }
 0x1cf   : > { %v1447_v15 = vadd.f32 %v1141_v14, %v1040_v13  ;;  %v654_v16 = vpop.f32.mrb[1].mxu1 }
 0x1d0   : > { %v1449_v17 = vadd.f32 %v1040_v13, %v654_v16 }
 0x1d1   : > { %v737_v18 = vsel %vm733_vm1, %v1447_v15, -inf }
 0x1d2   : > { %738 = vmax.xlane.f32.xlu0 %v737_v18  ;;  %v1144_v19 = vpop.f32.mrb[2].mxu1  ;;  %v734_v24 = vsel %vm733_vm1, %v1449_v17, -inf }
 0x1d3   : > { %v1453_v20 = vadd.f32 %v1144_v19, %v1040_v13  ;;  %v664_v21 = vpop.f32.mrb[3].mxu1 }
 0x1d4   : > { %v1455_v22 = vadd.f32 %v1040_v13, %v664_v21 }
 0x1d5   : > { %v743_v23 = vsel %vm733_vm1, %v1453_v20, -inf }
 0x1d6   : > { %744 = vmax.xlane.f32.xlu1 %v743_v23  ;;  %v1147_v25 = vpop.f32.mrb[4].mxu1  ;;  %735 = vmax.xlane.f32.xlu0 %v734_v24  ;;  %v740_v30 = vsel %vm733_vm1, %v1455_v22, -inf }
 0x1d7   : > { %v674_v26 = vpop.f32.mrb[5].mxu1  ;;  %v1463_v29 = vadd.f32 %v1147_v25, %v1040_v13 }
 0x1d8   : > { %v1461_v27 = vadd.f32 %v1040_v13, %v674_v26 }
 0x1d9   : > { %v749_v36 = vsel %vm733_vm1, %v1463_v29, -inf }
 0x1da   : > { %v1150_v31 = vpop.f32.mrb[6].mxu1  ;;  %741 = vmax.xlane.f32.xlu1 %v740_v30  ;;  %v746_v32 = vsel %vm733_vm1, %v1461_v27, -inf }
 0x1db   : > { %v684_v33 = vpop.f32.mrb[7].mxu1  ;;  %747 = vmax.xlane.f32.xlu0 %v746_v32  ;;  %v1471_v35 = vadd.f32 %v1150_v31, %v1040_v13 }
 0x1dc   : > { %v1469_v34 = vadd.f32 %v1040_v13, %v684_v33 }
 0x1dd   : > { %v755_v42 = vsel %vm733_vm1, %v1471_v35, -inf }
 0x1de   : > { %v1153_v37 = vpop.f32.mrb[8].mxu1  ;;  %750 = vmax.xlane.f32.xlu1 %v749_v36  ;;  %v752_v38 = vsel %vm733_vm1, %v1469_v34, -inf }
 0x1df   : > { %v694_v39 = vpop.f32.mrb[9].mxu1  ;;  %753 = vmax.xlane.f32.xlu0 %v752_v38  ;;  %v1479_v41 = vadd.f32 %v1153_v37, %v1040_v13 }
 0x1e0   : > { %v1477_v40 = vadd.f32 %v1040_v13, %v694_v39 }
 0x1e1   : > { %v761_v49 = vsel %vm733_vm1, %v1479_v41, -inf }
 0x1e2   : > { %v1156_v43 = vpop.f32.mrb[10].mxu1  ;;  %756 = vmax.xlane.f32.xlu1 %v755_v42  ;;  %v758_v44 = vsel %vm733_vm1, %v1477_v40, -inf }
 0x1e3   : > { %v704_v45 = vpop.f32.mrb[11].mxu1  ;;  %759 = vmax.xlane.f32.xlu0 %v758_v44  ;;  %v1487_v47 = vadd.f32 %v1156_v43, %v1040_v13 }
 0x1e4   : > { %v1485_v46 = vadd.f32 %v1040_v13, %v704_v45 }
 0x1e5   : > { %v767_v53 = vsel %vm733_vm1, %v1487_v47, -inf }
 0x1e6   : > { %v1159_v50 = vpop.f32.mrb[12].mxu1  ;;  %762 = vmax.xlane.f32.xlu1 %v761_v49  ;;  %v764_v51 = vsel %vm733_vm1, %v1485_v46, -inf }
 0x1e7   : > { %v714_v52 = vpop.f32.mrb[13].mxu1  ;;  %765 = vmax.xlane.f32.xlu0 %v764_v51  ;;  %v1495_v48 = vadd.f32 %v1159_v50, %v1040_v13 }
 0x1e8   : > { %v1493_v28 = vadd.f32 %v1040_v13, %v714_v52 }
 0x1e9   : > { %v773_v60 = vsel %vm733_vm1, %v1495_v48, -inf }
 0x1ea   : > { %v1162_v54 = vpop.f32.mrb[14].mxu1  ;;  %768 = vmax.xlane.f32.xlu1 %v767_v53  ;;  %v770_v55 = vsel %vm733_vm1, %v1493_v28, -inf }
 0x1eb   : > { %v724_v56 = vpop.f32.mrb[15].mxu1  ;;  %771 = vmax.xlane.f32.xlu0 %v770_v55  ;;  %v1503_v59 = vadd.f32 %v1162_v54, %v1040_v13 }
 0x1ec   : > { %v1501_v57 = vadd.f32 %v1040_v13, %v724_v56 }
 0x1ed   : > { %v779_v62 = vsel %vm733_vm1, %v1503_v59, -inf }
 0x1ee   : > { %774 = vmax.xlane.f32.xlu1 %v773_v60  ;;  %v776_v61 = vsel %vm733_vm1, %v1501_v57, -inf }
 0x1ef   : > { %777 = vmax.xlane.f32.xlu0 %v776_v61 }
 0x1f2   : > { %780 = vmax.xlane.f32.xlu1 %v779_v62 }
 0x25f   : > { %v1511_v58 = vpop.xlane.xlu0 %738 }
 0x260   : > { %v783_v63 = vsub.f32 %v1447_v15, %v1511_v58 }
 0x262   : > { %v800_v0 = vmul.f32 1.442695, %v783_v63 }
 0x263   : > { %v1515_v1 = vpop.xlane.xlu1 %744  ;;  %v1517_v2 = vpop.xlane.xlu0 %735 }
 0x264   : > { %1219 = vpow2.f32 %v800_v0  ;;  %v785_v3 = vsub.f32 %v1453_v20, %v1515_v1  ;;  %v782_v4 = vsub.f32 %v1449_v17, %v1517_v2 }
 0x266   : > { %v804_v5 = vmul.f32 1.442695, %v785_v3  ;;  %v798_v6 = vmul.f32 1.442695, %v782_v4 }
 0x267   : > { %v1523_v7 = vpop.xlane.xlu1 %741 }
 0x268   : > { %1221 = vpow2.f32 %v804_v5  ;;  %v784_v8 = vsub.f32 %v1455_v22, %v1523_v7  ;;  %v1527_v9 = vpop.xlane.xlu0 %747 }
 0x269   : > { %1223 = vpow2.f32 %v798_v6  ;;  %v786_v10 = vsub.f32 %v1461_v27, %v1527_v9 }
 0x26a   : > { %v802_v11 = vmul.f32 1.442695, %v784_v8 }
 0x26b   : > { %v806_v12 = vmul.f32 1.442695, %v786_v10  ;;  %v1531_v13 = vpop.xlane.xlu1 %750 }
 0x26c   : > { %1225 = vpow2.f32 %v802_v11  ;;  %v787_v14 = vsub.f32 %v1463_v29, %v1531_v13  ;;  %v1535_v16 = vpop.xlane.xlu0 %753 }
 0x26d   : > { %v788_v18 = vsub.f32 %v1469_v34, %v1535_v16  ;;  %1227 = vpow2.f32 %v806_v12 }
 0x26e   : > { %v1220_v19 = vpop.eup %1219  ;;  %v808_v21 = vmul.f32 1.442695, %v787_v14 }
 0x26f   : > { %v810_v23 = vmul.f32 1.442695, %v788_v18  ;;  %v1539_v24 = vpop.xlane.xlu1 %756  ;;  %v833_v25 = vsel %vm733_vm1, %v1220_v19, 0.0 }
 0x270   : > { %1229 = vpow2.f32 %v808_v21  ;;  %v789_v26 = vsub.f32 %v1471_v35, %v1539_v24  ;;  %834 = vadd.xlane.f32.xlu1 %v833_v25  ;;  %v1544_v30 = vpop.xlane.xlu0 %759 }
 0x271   : > { %v790_v31 = vsub.f32 %v1477_v40, %v1544_v30  ;;  %1231 = vpow2.f32 %v810_v23 }
 0x272   : > { %v1222_v32 = vpop.eup %1221  ;;  %v812_v33 = vmul.f32 1.442695, %v789_v26 }
 0x273   : > { %v1224_v36 = vpop.eup %1223  ;;  %v814_v37 = vmul.f32 1.442695, %v790_v31  ;;  %v1548_v38 = vpop.xlane.xlu1 %762  ;;  %v839_v39 = vsel %vm733_vm1, %v1222_v32, 0.0 }
 0x274   : > { %1233 = vpow2.f32 %v812_v33  ;;  %v791_v42 = vsub.f32 %v1479_v41, %v1548_v38  ;;  %840 = vadd.xlane.f32.xlu1 %v839_v39  ;;  %v830_v43 = vsel %vm733_vm1, %v1224_v36, 0.0  ;;  %v1554_v44 = vpop.xlane.xlu0 %765 }
 0x275   : > { %831 = vadd.xlane.f32.xlu0 %v830_v43  ;;  %v792_v45 = vsub.f32 %v1485_v46, %v1554_v44  ;;  %1235 = vpow2.f32 %v814_v37 }
 0x276   : > { %v1226_v49 = vpop.eup %1225  ;;  %v816_v50 = vmul.f32 1.442695, %v791_v42 }
 0x277   : > { %v818_v51 = vmul.f32 1.442695, %v792_v45  ;;  %v1558_v52 = vpop.xlane.xlu1 %768  ;;  %v836_v53 = vsel %vm733_vm1, %v1226_v49, 0.0  ;;  %v1228_v56 = vpop.eup %1227 }
 0x278   : > { %1237 = vpow2.f32 %v816_v50  ;;  %v793_v54 = vsub.f32 %v1487_v47, %v1558_v52  ;;  %v1563_v55 = vpop.xlane.xlu0 %771  ;;  %v842_v5 = vsel %vm733_vm1, %v1228_v56, 0.0 }
 0x279   : > { %837 = vadd.xlane.f32.xlu0 %v836_v53  ;;  %v794_v60 = vsub.f32 %v1493_v28, %v1563_v55  ;;  %1239 = vpow2.f32 %v818_v51 }
 0x27a   : > { %v1230_v61 = vpop.eup %1229  ;;  %v820_v62 = vmul.f32 1.442695, %v793_v54 }
 0x27b   : > { %v822_v63 = vmul.f32 1.442695, %v794_v60  ;;  %v1567_v0 = vpop.xlane.xlu1 %774  ;;  %v845_v3 = vsel %vm733_vm1, %v1230_v61, 0.0  ;;  %v1232_v8 = vpop.eup %1231 }
 0x27c   : > { %1241 = vpow2.f32 %v820_v62  ;;  %v795_v4 = vsub.f32 %v1495_v48, %v1567_v0  ;;  %846 = vadd.xlane.f32.xlu1 %v845_v3  ;;  %v1573_v6 = vpop.xlane.xlu0 %777  ;;  %v848_v23 = vsel %vm733_vm1, %v1232_v8, 0.0 }
 0x27d   : > { %843 = vadd.xlane.f32.xlu0 %v842_v5  ;;  %v796_v10 = vsub.f32 %v1501_v57, %v1573_v6  ;;  %1243 = vpow2.f32 %v822_v63 }
 0x27e   : > { %v1234_v11 = vpop.eup %1233  ;;  %v824_v12 = vmul.f32 1.442695, %v795_v4 }
 0x27f   : > { %v826_v14 = vmul.f32 1.442695, %v796_v10  ;;  %v1577_v18 = vpop.xlane.xlu1 %780  ;;  %v851_v19 = vsel %vm733_vm1, %v1234_v11, 0.0  ;;  %v1236_v25 = vpop.eup %1235 }
 0x280   : > { %1245 = vpow2.f32 %v824_v12  ;;  %v797_v21 = vsub.f32 %v1503_v59, %v1577_v18  ;;  %852 = vadd.xlane.f32.xlu1 %v851_v19  ;;  %v854_v33 = vsel %vm733_vm1, %v1236_v25, 0.0 }
 0x281   : > { %849 = vadd.xlane.f32.xlu0 %v848_v23  ;;  %1247 = vpow2.f32 %v826_v14 }
 0x282   : > { %v1238_v26 = vpop.eup %1237  ;;  %v828_v31 = vmul.f32 1.442695, %v797_v21 }
 0x283   : > { %v857_v32 = vsel %vm733_vm1, %v1238_v26, 0.0  ;;  %v1240_v36 = vpop.eup %1239 }
 0x284   : > { %1249 = vpow2.f32 %v828_v31  ;;  %858 = vadd.xlane.f32.xlu1 %v857_v32  ;;  %v860_v42 = vsel %vm733_vm1, %v1240_v36, 0.0 }
 0x285   : > { %855 = vadd.xlane.f32.xlu0 %v854_v33 }
 0x286   : > { %v1242_v37 = vpop.eup %1241 }
 0x287   : > { %v863_v39 = vsel %vm733_vm1, %v1242_v37, 0.0  ;;  %v1244_v43 = vpop.eup %1243 }
 0x288   : > { %864 = vadd.xlane.f32.xlu1 %v863_v39  ;;  %v866_v50 = vsel %vm733_vm1, %v1244_v43, 0.0 }
 0x289   : > { %861 = vadd.xlane.f32.xlu0 %v860_v42 }
 0x28a   : > { %v1246_v45 = vpop.eup %1245 }
 0x28b   : > { %v869_v49 = vsel %vm733_vm1, %v1246_v45, 0.0  ;;  %v1248_v51 = vpop.eup %1247 }
 0x28c   : > { %870 = vadd.xlane.f32.xlu1 %v869_v49  ;;  %v872_v56 = vsel %vm733_vm1, %v1248_v51, 0.0 }
 0x28d   : > { %867 = vadd.xlane.f32.xlu0 %v866_v50 }
 0x28e   : > { %v1250_v53 = vpop.eup %1249 }
 0x28f   : > { %v875_v54 = vsel %vm733_vm1, %v1250_v53, 0.0 }
 0x290   : > { %876 = vadd.xlane.f32.xlu1 %v875_v54 }
 0x291   : > { %873 = vadd.xlane.f32.xlu0 %v872_v56 }
 0x2fd   : > { %v835_v60 = vpop.xlane.xlu1 %834 }
 0x2fe   : > { %1251 = vlog2.f32 %v835_v60 }
 0x301   : > { %v841_v61 = vpop.xlane.xlu1 %840 }
 0x302   : > { %1253 = vlog2.f32 %v841_v61  ;;  %v832_v62 = vpop.xlane.xlu0 %831 }
 0x303   : > { %1255 = vlog2.f32 %v832_v62 }
 0x306   : > { %v838_v63 = vpop.xlane.xlu0 %837 }
 0x307   : > { %1257 = vlog2.f32 %v838_v63 }
 0x308   : > { %v1252_v3 = vpop.eup %1251 }
 0x309   : > { %v881_v4 = vmul.f32 0.6931472, %v1252_v3  ;;  %v847_v5 = vpop.xlane.xlu1 %846 }
 0x30a   : > { %1259 = vlog2.f32 %v847_v5  ;;  %v844_v8 = vpop.xlane.xlu0 %843 }
 0x30b   : > { %v911_v10 = vadd.f32 %v881_v4, %v1511_v58  ;;  %1261 = vlog2.f32 %v844_v8 }
 0x30c   : > { %v1254_v11 = vpop.eup %1253 }
 0x30d   : > { %v1256_v12 = vpop.eup %1255  ;;  %v927_v14 = vsub.f32 %v1447_v15, %v911_v10  ;;  %v885_v19 = vmul.f32 0.6931472, %v1254_v11  ;;  %v853_v21 = vpop.xlane.xlu1 %852 }
 0x30e   : > { %v879_v23 = vmul.f32 0.6931472, %v1256_v12  ;;  %1263 = vlog2.f32 %v853_v21  ;;  %v850_v25 = vpop.xlane.xlu0 %849 }
 0x30f   : > { %943 = vst.msk [vmem:[%s1597_s23 + $0x8] sm:$0xff] %vm733_vm1, %v927_v14  ;;  %v913_v58 = vadd.f32 %v885_v19, %v1515_v1  ;;  %1265 = vlog2.f32 %v850_v25 }
 0x310   : > { %v910_v26 = vadd.f32 %v879_v23, %v1517_v2 }
 0x311   : > { %v1258_v31 = vpop.eup %1257  ;;  %v929_v32 = vsub.f32 %v1453_v20, %v913_v58  ;;  %v859_v33 = vpop.xlane.xlu1 %858 }
 0x312   : > { %v926_v15 = vsub.f32 %v1449_v17, %v910_v26  ;;  %v883_v36 = vmul.f32 0.6931472, %v1258_v31  ;;  %1267 = vlog2.f32 %v859_v33  ;;  %v856_v37 = vpop.xlane.xlu0 %855 }
 0x313   : > { %945 = vst.msk [vmem:[%s1597_s23 + $0x18] sm:$0xff] %vm733_vm1, %v929_v32  ;;  %1269 = vlog2.f32 %v856_v37 }
 0x314   : > { %v1260_v39 = vpop.eup %1259  ;;  %942 = vst.msk [vmem:[%s1597_s23] sm:$0xff] %vm733_vm1, %v926_v15  ;;  %v912_v1 = vadd.f32 %v883_v36, %v1523_v7 }
 0x315   : > { %v1262_v42 = vpop.eup %1261  ;;  %v889_v2 = vmul.f32 0.6931472, %v1260_v39  ;;  %v865_v43 = vpop.xlane.xlu1 %864 }
 0x316   : > { %v928_v20 = vsub.f32 %v1455_v22, %v912_v1  ;;  %v887_v45 = vmul.f32 0.6931472, %v1262_v42  ;;  %1271 = vlog2.f32 %v865_v43  ;;  %v862_v17 = vpop.xlane.xlu0 %861 }
 0x317   : > { %v915_v49 = vadd.f32 %v889_v2, %v1531_v13  ;;  %1273 = vlog2.f32 %v862_v17 }
 0x318   : > { %v1264_v50 = vpop.eup %1263  ;;  %944 = vst.msk [vmem:[%s1597_s23 + $0x10] sm:$0xff] %vm733_vm1, %v928_v20  ;;  %v914_v51 = vadd.f32 %v887_v45, %v1527_v9 }
 0x319   : > { %v1266_v53 = vpop.eup %1265  ;;  %v931_v7 = vsub.f32 %v1463_v29, %v915_v49  ;;  %v893_v54 = vmul.f32 0.6931472, %v1264_v50  ;;  %v871_v56 = vpop.xlane.xlu1 %870 }
 0x31a   : > { %v930_v22 = vsub.f32 %v1461_v27, %v914_v51  ;;  %v891_v60 = vmul.f32 0.6931472, %v1266_v53  ;;  %1275 = vlog2.f32 %v871_v56  ;;  %v868_v61 = vpop.xlane.xlu0 %867 }
 0x31b   : > { %947 = vst.msk [vmem:[%s1597_s23 + $0x28] sm:$0xff] %vm733_vm1, %v931_v7  ;;  %v917_v13 = vadd.f32 %v893_v54, %v1539_v24  ;;  %1277 = vlog2.f32 %v868_v61 }
 0x31c   : > { %v1268_v62 = vpop.eup %1267  ;;  %946 = vst.msk [vmem:[%s1597_s23 + $0x20] sm:$0xff] %vm733_vm1, %v930_v22  ;;  %v916_v9 = vadd.f32 %v891_v60, %v1535_v16 }
 0x31d   : > { %v1270_v29 = vpop.eup %1269  ;;  %v933_v63 = vsub.f32 %v1471_v35, %v917_v13  ;;  %v897_v3 = vmul.f32 0.6931472, %v1268_v62  ;;  %v877_v27 = vpop.xlane.xlu1 %876 }
 0x31e   : > { %v932_v4 = vsub.f32 %v1469_v34, %v916_v9  ;;  %v895_v5 = vmul.f32 0.6931472, %v1270_v29  ;;  %1279 = vlog2.f32 %v877_v27  ;;  %v874_v8 = vpop.xlane.xlu0 %873 }
 0x31f   : > { %949 = vst.msk [vmem:[%s1597_s23 + $0x38] sm:$0xff] %vm733_vm1, %v933_v63  ;;  %v919_v24 = vadd.f32 %v897_v3, %v1548_v38  ;;  %1281 = vlog2.f32 %v874_v8 }
 0x320   : > { %v1272_v10 = vpop.eup %1271  ;;  %948 = vst.msk [vmem:[%s1597_s23 + $0x30] sm:$0xff] %vm733_vm1, %v932_v4  ;;  %v918_v16 = vadd.f32 %v895_v5, %v1544_v30 }
 0x321   : > { %v1274_v35 = vpop.eup %1273  ;;  %v935_v11 = vsub.f32 %v1479_v41, %v919_v24  ;;  %v901_v12 = vmul.f32 0.6931472, %v1272_v10 }
 0x322   : > { %v934_v34 = vsub.f32 %v1477_v40, %v918_v16  ;;  %v899_v14 = vmul.f32 0.6931472, %v1274_v35 }
 0x323   : > { %951 = vst.msk [vmem:[%s1597_s23 + $0x48] sm:$0xff] %vm733_vm1, %v935_v11  ;;  %v921_v19 = vadd.f32 %v901_v12, %v1558_v52 }
 0x324   : > { %v1276_v38 = vpop.eup %1275  ;;  %950 = vst.msk [vmem:[%s1597_s23 + $0x40] sm:$0xff] %vm733_vm1, %v934_v34  ;;  %v920_v21 = vadd.f32 %v899_v14, %v1554_v44 }
 0x325   : > { %v1278_v30 = vpop.eup %1277  ;;  %v937_v23 = vsub.f32 %v1487_v47, %v921_v19  ;;  %v905_v41 = vmul.f32 0.6931472, %v1276_v38 }
 0x326   : > { %v936_v25 = vsub.f32 %v1485_v46, %v920_v21  ;;  %v903_v58 = vmul.f32 0.6931472, %v1278_v30 }
 0x327   : > { %953 = vst.msk [vmem:[%s1597_s23 + $0x58] sm:$0xff] %vm733_vm1, %v937_v23  ;;  %v923_v40 = vadd.f32 %v905_v41, %v1567_v0 }
 0x328   : > { %v1280_v52 = vpop.eup %1279  ;;  %952 = vst.msk [vmem:[%s1597_s23 + $0x50] sm:$0xff] %vm733_vm1, %v936_v25  ;;  %v922_v44 = vadd.f32 %v903_v58, %v1563_v55 }
 0x329   : > { %v1282_v26 = vpop.eup %1281  ;;  %v939_v31 = vsub.f32 %v1495_v48, %v923_v40  ;;  %v909_v47 = vmul.f32 0.6931472, %v1280_v52 }
 0x32a   : > { %v938_v32 = vsub.f32 %v1493_v28, %v922_v44  ;;  %v907_v33 = vmul.f32 0.6931472, %v1282_v26 }
 0x32b   : > { %955 = vst.msk [vmem:[%s1597_s23 + $0x68] sm:$0xff] %vm733_vm1, %v939_v31  ;;  %v925_v46 = vadd.f32 %v909_v47, %v1577_v18 }
 0x32c   : > { %954 = vst.msk [vmem:[%s1597_s23 + $0x60] sm:$0xff] %vm733_vm1, %v938_v32  ;;  %v924_v0 = vadd.f32 %v907_v33, %v1573_v6 }
 0x32d   : > { %v941_v15 = vsub.f32 %v1503_v59, %v925_v46 }
 0x32e   : > { %v940_v36 = vsub.f32 %v1501_v57, %v924_v0 }
 0x32f   : > { %957 = vst.msk [vmem:[%s1597_s23 + $0x78] sm:$0xff] %vm733_vm1, %v941_v15 }
 0x330   : > { %956 = vst.msk [vmem:[%s1597_s23 + $0x70] sm:$0xff] %vm733_vm1, %v940_v36 }
 0x331 PF: > { %s15_s18 = sadd.s32 1, %s1289_s18  }
 0x332   : > { %p12_p4 = scmp.ge.s32.totalorder %s15_s18, 6  }
 0x334   :  { %14 = sbr.rel (!%p12_p4) target bundleno = 1 (0x1), region = 70 }

</bundles_post_ra>
